<compile_context>
chip_gen: v6e
topology: v6e:2x2x1
jax: 0.10.0
libtpu: 0.0.40
codegen_flags: <defaults>
</compile_context>

<pallas_src>
import functools

import jax
import jax.numpy as jnp
from jax import lax
from jax.experimental import pallas as pl
from jax.experimental.pallas import tpu as pltpu


def _round_up(x, n):
    return (x + n - 1) // n * n


# ----------------------------- phase 1 -------------------------------------- #
def _pool_normalize_kernel(a_ref, b_ref, w_ref, an_ref, bn_ref):
    """Per batch tile: project A, attention-pool B_local, L2-normalize both."""
    A = a_ref[...]                        # (TB, n_feat1)     native dtype
    B = b_ref[...]                        # (TB, m, n_feat2)  native dtype
    W = w_ref[...]                        # (n_feat2, n_feat1) native dtype

    # A_proj = A @ W.T  (MXU, f32 accumulate; no full-tensor f32 upcast)
    A_proj = lax.dot_general(A, W, (((1,), (1,)), ((), ())),
                             preferred_element_type=jnp.float32)     # (TB, F2)

    # attention scores on the MXU: (TB,1,F2) x (TB,m,F2) -> (TB,1,m)
    scores = jnp.einsum("bqk,bmk->bqm",
                        A_proj.astype(B.dtype)[:, None, :], B,
                        preferred_element_type=jnp.float32)[:, 0, :]  # (TB, m)

    # numerically-stable exp; softmax denominator cancels in the normalization
    smax = jnp.max(scores, axis=-1, keepdims=True)
    e = jnp.exp(scores - smax)                                        # (TB, m)

    # un-normalized attention-weighted sum, again on the MXU:
    # (TB,1,m) x (TB,m,F2) -> (TB,1,F2)
    Bw = jnp.einsum("bqm,bmk->bqk",
                    e.astype(B.dtype)[:, None, :], B,
                    preferred_element_type=jnp.float32)[:, 0, :]      # (TB, F2)

    # F.normalize(x, dim=-1) == x * rsqrt(max(sum(x^2), eps^2))   (EUP rsqrt)
    eps2 = 1e-24
    A_n = A_proj * lax.rsqrt(
        jnp.maximum(jnp.sum(A_proj * A_proj, axis=-1, keepdims=True), eps2))
    B_n = Bw * lax.rsqrt(
        jnp.maximum(jnp.sum(Bw * Bw, axis=-1, keepdims=True), eps2))

    an_ref[...] = A_n
    bn_ref[...] = B_n


# ----------------------------- phase 2 -------------------------------------- #
def _finalize_kernel(an_ref, bn_ref, w_ref, o_ref, *, temperature, batch):
    A_n = an_ref[...]                     # (batch_p, F2) f32
    B_n = bn_ref[...]                     # (batch_p, F2) f32
    W = w_ref[...]                        # (F2, F1)

    batch_p = A_n.shape[0]
    n_feat2 = W.shape[0]
    inv_t = 1.0 / temperature

    positive = jnp.sum(A_n * B_n, axis=-1, keepdims=True)            # (bp, 1)
    sim = lax.dot_general(A_n, B_n, (((1,), (1,)), ((), ())),
                          preferred_element_type=jnp.float32)        # (bp, bp)

    # cross-entropy with label 0: loss_i = logsumexp(row_i / T) - positive_i / T
    logits = sim * inv_t
    col = lax.broadcasted_iota(jnp.int32, (batch_p, batch_p), 1)
    logits = jnp.where(col < batch, logits, -1e30)      # mask padded columns
    lmax = jnp.max(logits, axis=-1, keepdims=True)
    lse = lmax + jnp.log(jnp.sum(jnp.exp(logits - lmax), axis=-1, keepdims=True))
    per_row = lse - positive * inv_t                                  # (bp, 1)

    row = lax.broadcasted_iota(jnp.int32, (batch_p, 1), 0)
    per_row = jnp.where(row < batch, per_row, 0.0)      # mask padded rows
    ce = jnp.sum(per_row, axis=0, keepdims=True) * (1.0 / batch)      # (1, 1)

    # orthogonality penalty without eye/diff temporaries:
    # ||G - I||_F^2 = sum(G*G) - 2*trace(G) + n_feat2,  G = W @ W.T
    G = lax.dot_general(W, W, (((1,), (1,)), ((), ())),
                        preferred_element_type=jnp.float32)           # (F2, F2)
    gsq = jnp.sum(jnp.sum(G * G, axis=-1, keepdims=True), axis=0, keepdims=True)
    ii = lax.broadcasted_iota(jnp.int32, (n_feat2, n_feat2), 0)
    jj = lax.broadcasted_iota(jnp.int32, (n_feat2, n_feat2), 1)
    tr = jnp.sum(jnp.sum(jnp.where(ii == jj, G, 0.0), axis=-1, keepdims=True),
                 axis=0, keepdims=True)
    ortho = jnp.sqrt(jnp.maximum(gsq - 2.0 * tr + n_feat2, 0.0))      # (1, 1)

    o_ref[...] = ce + 0.01 * ortho


# ------------------------------ wrapper ------------------------------------- #
def feature_similarity_loss(A, B_local, W, temperature=0.1):
    """Pallas TPU implementation of FeatureSimilarityLoss.forward."""
    batch, n_feat1 = A.shape
    b2, m, n_feat2 = B_local.shape
    assert b2 == batch and W.shape == (n_feat2, n_feat1)

    # pad batch to a multiple of 8 so the batch-tile is sublane-legal; padded
    # rows produce zero features and are masked in the finalize kernel.
    batch_p = _round_up(batch, 8)
    if batch_p != batch:
        A = jnp.pad(A, ((0, batch_p - batch), (0, 0)))
        B_local = jnp.pad(B_local, ((0, batch_p - batch), (0, 0), (0, 0)))

    # Largest batch tile (multiple of 8, <= 128) dividing batch_p whose
    # double-buffered working set fits a conservative 40 MiB budget (sized for
    # v7x's 64 MiB/TC VMEM; also well under v5e/v6e's 128 MiB).
    itemsize = jnp.dtype(B_local.dtype).itemsize
    budget = 40 * 2**20
    tb, est = 8, None
    for cand in (128, 64, 32, 16, 8):
        if batch_p % cand != 0:
            continue
        cand_est = (2 * cand * m * n_feat2 * itemsize       # B tile, double-buffered
                    + 2 * cand * n_feat1 * itemsize         # A tile, double-buffered
                    + 4 * cand * n_feat2 * 4                # A_n / B_n out tiles
                    + 2 * n_feat2 * n_feat1 * itemsize      # W
                    + (3 * cand * m + 4 * cand * n_feat2) * 4)   # f32 temporaries
        tb, est = cand, cand_est
        if cand_est <= budget:
            break
    # TODO(synk): if even a TB=8 tile overflows the budget (very large m*n_feat2),
    # m would also need to be tiled with an inner reduction loop.
    vmem1 = int(min(48 * 2**20, max(24 * 2**20, 2 * est)))

    grid = (batch_p // tb,)
    A_n, B_n = pl.pallas_call(
        _pool_normalize_kernel,
        out_shape=(jax.ShapeDtypeStruct((batch_p, n_feat2), jnp.float32),
                   jax.ShapeDtypeStruct((batch_p, n_feat2), jnp.float32)),
        grid_spec=pltpu.PrefetchScalarGridSpec(
            num_scalar_prefetch=0,
            grid=grid,
            in_specs=[
                pl.BlockSpec((tb, n_feat1), lambda i: (i, 0)),        # A
                pl.BlockSpec((tb, m, n_feat2), lambda i: (i, 0, 0)),  # B_local
                pl.BlockSpec((n_feat2, n_feat1), lambda i: (0, 0)),   # W (invariant)
            ],
            out_specs=[
                pl.BlockSpec((tb, n_feat2), lambda i: (i, 0)),        # A_n
                pl.BlockSpec((tb, n_feat2), lambda i: (i, 0)),        # B_n
            ]),
        compiler_params=pltpu.CompilerParams(
            dimension_semantics=("parallel",),   # batch tiles shard across TCs
            vmem_limit_bytes=vmem1),
    )(A, B_local, W)

    # finalize: similarity matrix + CE + orthogonality penalty -> (1,1) scalar
    est2 = (4 * batch_p * n_feat2 * 4 + 2 * batch_p * batch_p * 4
            + 2 * n_feat2 * n_feat1 * itemsize + 3 * n_feat2 * n_feat2 * 4)
    vmem2 = int(min(48 * 2**20, max(16 * 2**20, 2 * est2)))
    # TODO(synk): for very large batch (batch_p^2 f32 approaching VMEM) the
    # finalize kernel would need its own row-tiling of the similarity matrix.
    out = pl.pallas_call(
        functools.partial(_finalize_kernel, temperature=float(temperature),
                          batch=batch),
        out_shape=jax.ShapeDtypeStruct((1, 1), jnp.float32),
        in_specs=[pl.BlockSpec(memory_space=pltpu.MemorySpace.VMEM)] * 3,
        out_specs=pl.BlockSpec(memory_space=pltpu.MemorySpace.VMEM),
        compiler_params=pltpu.CompilerParams(vmem_limit_bytes=vmem2),
    )(A_n, B_n, W)
    return out[0, 0]


# ------------------------------ reference ----------------------------------- #
def _reference_loss(A, B_local, W, temperature=0.1):
    """Pure-JAX reference mirroring the PyTorch forward exactly."""
    batch, _ = A.shape
    A_proj = A @ W.T
    scores = jnp.einsum("bmk,bk->bm", B_local, A_proj)
    attn = jax.nn.softmax(scores, axis=1)
    B_weighted = jnp.einsum("bmk,bm->bk", B_local, attn)

    def norm(x):
        n = jnp.sqrt(jnp.sum(x * x, axis=-1, keepdims=True))
        return x / jnp.maximum(n, 1e-12)

    A_n, B_n = norm(A_proj), norm(B_weighted)
    positive = jnp.sum(A_n * B_n, axis=-1)
    sim = A_n @ B_n.T
    mask = ~jnp.eye(batch, dtype=bool)
    negatives = sim[mask].reshape(batch, batch - 1)
    logits = jnp.concatenate([positive[:, None], negatives], axis=-1) / temperature
    ce = jnp.mean(-jax.nn.log_softmax(logits, axis=-1)[:, 0])
    ortho = jnp.linalg.norm(W @ W.T - jnp.eye(W.shape[0]))
    return ce + 0.01 * ortho


if __name__ == "__main__":
    batch, m, n_feat1, n_feat2 = 24, 8, 32, 16   # 3 batch tiles of 8 rows each
    temperature = 0.1

    key = jax.random.PRNGKey(0)
    k_a, k_b, k_w = jax.random.split(key, 3)
    A = jax.random.normal(k_a, (batch, n_feat1), dtype=jnp.float32)
    B_local = jax.random.normal(k_b, (batch, m, n_feat2), dtype=jnp.float32)
    # deterministic init mimicking nn.Linear default (uniform(+-1/sqrt(fan_in)))
    bound = 1.0 / (n_feat1 ** 0.5)
    W = jax.random.uniform(k_w, (n_feat2, n_feat1), dtype=jnp.float32,
                           minval=-bound, maxval=bound)

    loss = feature_similarity_loss(A, B_local, W, temperature)
    loss = jax.block_until_ready(loss)

    ref = _reference_loss(A, B_local, W, temperature)
    assert jnp.allclose(loss, ref, rtol=1e-4, atol=1e-4), (loss, ref)

    print("KERNEL_OK")
</pallas_src>

<mosaic_0001>
module attributes {stable_mosaic.version = 11 : i64} {
  func.func @_pool_normalize_kernel(%arg0: i32, %arg1: memref<8x32xf32, #tpu.memory_space<vmem>>, %arg2: memref<8x8x16xf32, #tpu.memory_space<vmem>>, %arg3: memref<16x32xf32, #tpu.memory_space<vmem>>, %arg4: memref<8x16xf32, #tpu.memory_space<vmem>>, %arg5: memref<8x16xf32, #tpu.memory_space<vmem>>) attributes {dimension_semantics = [#tpu.dimension_semantics<parallel>], iteration_bounds = array<i64: 3>, scalar_prefetch = 0 : i64, scratch_operands = 0 : i64, tpu.core_type = #tpu.core_type<tc>, window_params = [{transform_indices = @transform_0, window_bounds = array<i64: 8, 32>}, {transform_indices = @transform_1, window_bounds = array<i64: 8, 8, 16>}, {pipeline_mode = #tpu.pipeline_mode<synchronous>, transform_indices = @transform_2, window_bounds = array<i64: 16, 32>}, {transform_indices = @transform_3, window_bounds = array<i64: 8, 16>}, {transform_indices = @transform_4, window_bounds = array<i64: 8, 16>}]} {
    %c0 = arith.constant 0 : index
    %c0_0 = arith.constant 0 : index
    %0 = vector.load %arg1[%c0, %c0_0] : memref<8x32xf32, #tpu.memory_space<vmem>>, vector<8x32xf32>
    %c0_1 = arith.constant 0 : index
    %c0_2 = arith.constant 0 : index
    %c0_3 = arith.constant 0 : index
    %1 = vector.load %arg2[%c0_1, %c0_2, %c0_3] : memref<8x8x16xf32, #tpu.memory_space<vmem>>, vector<8x8x16xf32>
    %c0_4 = arith.constant 0 : index
    %c0_5 = arith.constant 0 : index
    %2 = vector.load %arg3[%c0_4, %c0_5] : memref<16x32xf32, #tpu.memory_space<vmem>>, vector<16x32xf32>
    %cst = arith.constant dense<0.000000e+00> : vector<8x16xf32>
    %3 = tpu.matmul %0, %2, %cst {dimension_numbers = #tpu.dot_dimension_numbers<[1], [1], [0], [0], [0, 0, 1, 0], [], []>} : vector<8x32xf32>, vector<16x32xf32>, vector<8x16xf32> -> vector<8x16xf32>
    %4 = vector.shape_cast %3 : vector<8x16xf32> to vector<8x1x16xf32>
    "tpu.trace_start"() <{level = 10 : i32, message = "bqk,bmk->bqm"}> : () -> ()
    %cst_6 = arith.constant dense<0.000000e+00> : vector<8x1x8xf32>
    %5 = tpu.matmul %4, %1, %cst_6 {dimension_numbers = #tpu.dot_dimension_numbers<[2], [2], [1], [1], [0, 0, 0, 1, 1, 1], [0], [0]>} : vector<8x1x16xf32>, vector<8x8x16xf32>, vector<8x1x8xf32> -> vector<8x1x8xf32>
    "tpu.trace_stop"() : () -> ()
    %6 = vector.shape_cast %5 : vector<8x1x8xf32> to vector<8x8xf32>
    %cst_7 = arith.constant dense<0xFF800000> : vector<8xf32>
    %7 = vector.multi_reduction <maximumf>, %6, %cst_7 [1] : vector<8x8xf32> to vector<8xf32>
    %8 = vector.shape_cast %7 : vector<8xf32> to vector<8x1xf32>
    %9 = vector.broadcast %8 : vector<8x1xf32> to vector<8x8xf32>
    %10 = arith.subf %6, %9 : vector<8x8xf32>
    %11 = math.exp %10 : vector<8x8xf32>
    %12 = vector.shape_cast %11 : vector<8x8xf32> to vector<8x1x8xf32>
    "tpu.trace_start"() <{level = 10 : i32, message = "bqm,bmk->bqk"}> : () -> ()
    %cst_8 = arith.constant dense<0.000000e+00> : vector<8x1x16xf32>
    %13 = tpu.matmul %12, %1, %cst_8 {dimension_numbers = #tpu.dot_dimension_numbers<[2], [1], [1], [2], [0, 0, 0, 1, 1, 2], [0], [0]>} : vector<8x1x8xf32>, vector<8x8x16xf32>, vector<8x1x16xf32> -> vector<8x1x16xf32>
    "tpu.trace_stop"() : () -> ()
    %14 = vector.shape_cast %13 : vector<8x1x16xf32> to vector<8x16xf32>
    %15 = arith.mulf %3, %3 : vector<8x16xf32>
    %cst_9 = arith.constant dense<0.000000e+00> : vector<8xf32>
    %16 = vector.multi_reduction <add>, %15, %cst_9 [1] : vector<8x16xf32> to vector<8xf32>
    %17 = vector.shape_cast %16 : vector<8xf32> to vector<8x1xf32>
    %cst_10 = arith.constant 1.000000e-24 : f32
    %18 = vector.broadcast %cst_10 : f32 to vector<8x1xf32>
    %19 = arith.maximumf %17, %18 : vector<8x1xf32>
    %20 = math.rsqrt %19 : vector<8x1xf32>
    %21 = vector.broadcast %20 : vector<8x1xf32> to vector<8x16xf32>
    %22 = arith.mulf %3, %21 : vector<8x16xf32>
    %23 = arith.mulf %14, %14 : vector<8x16xf32>
    %cst_11 = arith.constant dense<0.000000e+00> : vector<8xf32>
    %24 = vector.multi_reduction <add>, %23, %cst_11 [1] : vector<8x16xf32> to vector<8xf32>
    %25 = vector.shape_cast %24 : vector<8xf32> to vector<8x1xf32>
    %cst_12 = arith.constant 1.000000e-24 : f32
    %26 = vector.broadcast %cst_12 : f32 to vector<8x1xf32>
    %27 = arith.maximumf %25, %26 : vector<8x1xf32>
    %28 = math.rsqrt %27 : vector<8x1xf32>
    %29 = vector.broadcast %28 : vector<8x1xf32> to vector<8x16xf32>
    %30 = arith.mulf %14, %29 : vector<8x16xf32>
    %c0_13 = arith.constant 0 : index
    %c0_14 = arith.constant 0 : index
    %31 = vector.load %arg4[%c0_13, %c0_14] : memref<8x16xf32, #tpu.memory_space<vmem>>, vector<8x16xf32>
    tpu.vector_store %arg4[%c0_13, %c0_14], %22 {strides = array<i32>} : memref<8x16xf32, #tpu.memory_space<vmem>>, vector<8x16xf32>,
    %c0_15 = arith.constant 0 : index
    %c0_16 = arith.constant 0 : index
    %32 = vector.load %arg5[%c0_15, %c0_16] : memref<8x16xf32, #tpu.memory_space<vmem>>, vector<8x16xf32>
    tpu.vector_store %arg5[%c0_15, %c0_16], %30 {strides = array<i32>} : memref<8x16xf32, #tpu.memory_space<vmem>>, vector<8x16xf32>,
    return
  }
  func.func @transform_0(%arg0: i32) -> (i32, i32) {
    %c0_i32 = arith.constant 0 : i32
    %c0_i32_0 = arith.constant 0 : i32
    return %arg0, %c0_i32 : i32, i32
  }
  func.func @transform_1(%arg0: i32) -> (i32, i32, i32) {
    %c0_i32 = arith.constant 0 : i32
    %c0_i32_0 = arith.constant 0 : i32
    %c0_i32_1 = arith.constant 0 : i32
    return %arg0, %c0_i32, %c0_i32_0 : i32, i32, i32
  }
  func.func @transform_2(%arg0: i32) -> (i32, i32) {
    %c0_i32 = arith.constant 0 : i32
    %c0_i32_0 = arith.constant 0 : i32
    %c0_i32_1 = arith.constant 0 : i32
    return %c0_i32, %c0_i32_0 : i32, i32
  }
  func.func @transform_3(%arg0: i32) -> (i32, i32) {
    %c0_i32 = arith.constant 0 : i32
    %c0_i32_0 = arith.constant 0 : i32
    return %arg0, %c0_i32 : i32, i32
  }
  func.func @transform_4(%arg0: i32) -> (i32, i32) {
    %c0_i32 = arith.constant 0 : i32
    %c0_i32_0 = arith.constant 0 : i32
    return %arg0, %c0_i32 : i32, i32
  }
}

</mosaic_0001>

<bundles_post_ra>
// kernel: tpu_custom_call.1
= control target key start
LH: loop header
LB: loop body
LE: loop exit
PB: predicated region body
PF: predicated region fallthrough
CT: control target
= control target key end

     0   :  { %s2042_s15 = smov 0   ;;  %s2215_s0 = inlined_call_operand.vmem [shape: f32[24,32], index: 0, kind: input, shape index: {}]   ;;  %s2216_s1 = inlined_call_operand.vmem [shape: f32[24,8,16], index: 1, kind: input, shape index: {}]   ;;  %s2217_s2 = inlined_call_operand.vmem [shape: f32[16,32], index: 2, kind: input, shape index: {}]   ;;  %s2218_s3 = inlined_call_operand.vmem [shape: f32[24,16], index: 3, kind: output, shape index: {0}]   ;;  %s2219_s4 = inlined_call_operand.vmem [shape: f32[24,16], index: 4, kind: output, shape index: {1}]  }
   0x1 LB: > { %s1814_s16 = sadd.s32 4294967295, %s2012_s15   ;;  %p1818_p0 = scmp.ge.s32.totalorder %s2012_s15, 1  ;;  %s2012_s15 = sphi %s2042_s15, %s15_s15  }
   0x2   : > { %p175_p1 = scmp.lt.s32.totalorder %s2012_s15, 4 }
   0x4   : > { %p176_p2 = pnand %p1818_p0, %p175_p1 }
   0x5   : > { %p208_p3 = scmp.lt.s32.totalorder (!%p176_p2), %s1814_s16, 2  ;;  %s1820_s26 = sshll.u32 (!%p176_p2), %s1814_s16, 3 }
   0x6   : > { %179 = sbr.rel (%p176_p2) target bundleno = 967 (0x3c7), region = 32  ;;  %p213_p4 = scmp.lt.s32.totalorder (!%p176_p2), %s1820_s26, 23 }
   0xb   : > { %v236_v0 = vld [vmem:[%s2217_s2 + $0x8] sm:$0xff]  ;;  %vm237_vm0 = vcmask 261120   ;;  %v2014_v1 = vmov 0.0   ;;  %vm2015_vm1 = vmmov 0   ;;  %s209_s19 = scalar_select %p208_p3, %s1814_s16, 2  ;;  %v235_v2 = vld [vmem:[%s2217_s2] sm:$0xff]  ;;  %v322_v8 = vlaneseq }
   0xc   : > { %1888 = vmatprep.subr.mxu0 %v2014_v1  ;;  %1892 = vmatprep.mubr.msk.f32.mxu0 %vm2015_vm1, %v2014_v1  ;;  %s2221_s26 = smov (!%p213_p4, %s1820_s26), 23  ;;  %vm367_vm2 = vcmask 130048   ;;  %v2016_v6 = vmov 1966171168   ;;  %vm977_vm3 = vcmask 1041409   ;;  %vm980_vm4 = vcmask 1042434  }
   0xd   : > { %1889 = vmatpush3.xpose.msk.msra.mxu0 %vm237_vm0, %v236_v0  ;;  %1895 = vmatprep.subr.mxu1 %v2014_v1  ;;  %s2064_s22 = sshll.u32 %s209_s19, 3  ;;  %s1821_s27 = sshll.u32 %s2221_s26, 3  ;;  %v320_v7 = vunpack.c.l.s4 %v2016_v6  ;;  %v323_v10 = vshrl.u32 %v322_v8, 7  ;;  %vm983_vm5 = vcmask 1043459   ;;  %vm986_vm6 = vcmask 1044484  }
   0xe   : > { %1890 = vmatprep.subr.mxu0 %v2014_v1  ;;  %1897 = vmatprep.mubr.msk.f32.mxu1 %vm2015_vm1, %v2014_v1  ;;  %s211_s25 = scalar_lea.vmem %s2215_s0, %s2064_s22  ;;  %s2078_s30 = scalar_lea.vmem %s2216_s1, %s1821_s27  ;;  %vm989_vm7 = vcmask 1045509   ;;  %vm992_vm8 = vcmask 1046534   ;;  %vm995_vm9 = vcmask 1047559   ;;  %vm998_vm10 = vcmask 64512  }
   0xf   : > { %v226_v3 = vld [vmem:[%s211_s25] sm:$0xff]  ;;  %v2084_v5 = vld [vmem:[%s2078_s30 + $0x10] sm:$0xff]  ;;  %v321_v9 = vunpack.c.0.s8 %v320_v7  ;;  %v228_v20 = vld [vmem:[%s2078_s30 + $0x8] sm:$0xff]  ;;  %s221_s7 = scalar_lea.vmem %s2218_s3, %s2064_s22  ;;  %s225_s10 = scalar_lea.vmem %s2219_s4, %s2064_s22 }
  0x10   : > { %v227_v4 = vld [vmem:[%s2078_s30] sm:$0xff]  ;;  %v2101_v25 = vld [vmem:[%s2078_s30 + $0x18] sm:$0xff]  ;;  %v2110_v27 = vld [vmem:[%s2078_s30 + $0x30] sm:$0xff] }
  0x11   : > { %1891 = vmatpush3.xpose.msk.msra.mxu0 %vm237_vm0, %v235_v2  ;;  %1896 = vmatpush3.xpose.msk.msra.mxu1 %vm367_vm2, %v227_v4  ;;  %v324_v11 = vsub.s32 %v321_v9, %v323_v10  ;;  %v2093_v23 = vld [vmem:[%s2078_s30 + $0x20] sm:$0xff]  ;;  %v2119_v30 = vld [vmem:[%s2078_s30 + $0x28] sm:$0xff]  ;;  %v2134_v33 = vld [vmem:[%s2078_s30 + $0x38] sm:$0xff] }
  0x12   : > { %1905 = vmatprep.subr.mxu0 %v2014_v1  ;;  %1900 = vmatprep.subr.mxu1 %v2014_v1 }
  0x14   : > { %1893 = vmatmul.mubr.msk.f32.vlgmr.msra.gmra.mxu0 %vm237_vm0, %v226_v3 }
  0x15   : > { %1907 = vmatprep.mubr.msk.f32.mxu0 %vm2015_vm1, %v2014_v1  ;;  %1906 = vmatpush3.xpose.msk.msra.mxu0 %vm367_vm2, %v2084_v5 }
  0x16   : > { %1915 = vmatprep.subr.mxu0 %v2014_v1 }
  0xd4   : > { %v313_v12 = vpop.f32.mrf.mxu0 }
  0xd5   : > { %v318_v13 = vcombine.high %v313_v12, %v313_v12  ;;  %v325_v14 = vrot.slane %v313_v12, %v324_v11  ;;  %v1626_v15 = vmul.f32 %v313_v12, %v313_v12 }
  0xd6   : > { %v1894_v16 = vpop.f32.mrf.mxu0 }
  0xd7   : > { %v333_v17 = vcombine.high %v325_v14, %v325_v14  ;;  %v1627_v18 = vsel %vm367_vm2, %v1626_v15, 0.0  ;;  %v341_v19 = vrot.slane %v325_v14, %v324_v11  ;;  %v332_v21 = vrot.slane %v318_v13, %v324_v11 }
  0xd8   : > { %1628 = vadd.xlane.f32.xlu1 %v1627_v18 }
  0xd9   : > { %v363_v22 = vcombine.high %v341_v19, %v341_v19  ;;  %1898 = vmatmul.mubr.msk.f32.vlgmr.msra.gmra.mxu1 %vm367_vm2, %v341_v19  ;;  %v355_v24 = vrot.slane %v333_v17, %v324_v11  ;;  %v348_v26 = vrot.slane %v332_v21, %v324_v11  ;;  %v334_v28 = vcombine.high %v332_v21, %v332_v21 }
  0xda   : > { %1901 = vmatpush3.xpose.msk.msra.mxu1 %vm367_vm2, %v228_v20  ;;  %1902 = vmatprep.mubr.msk.f32.mxu1 %vm2015_vm1, %v2014_v1 }
  0xdb   : > { %1908 = vmatmul.mubr.msk.f32.vlgmr.msra.gmra.mxu0 %vm367_vm2, %v363_v22  ;;  %1910 = vmatprep.subr.mxu1 %v2014_v1  ;;  %v365_v29 = vcombine.high %v355_v24, %v355_v24  ;;  %v364_v31 = vcombine.high %v348_v26, %v348_v26  ;;  %v362_v32 = vrot.slane %v334_v28, %v324_v11 }
  0xdc   : > { %1916 = vmatpush3.xpose.msk.msra.mxu0 %vm367_vm2, %v2093_v23  ;;  %1917 = vmatprep.mubr.msk.f32.mxu0 %vm2015_vm1, %v2014_v1 }
  0xdd   : > { %1903 = vmatmul.mubr.msk.f32.vlgmr.msra.gmra.mxu1 %vm367_vm2, %v355_v24  ;;  %1925 = vmatprep.subr.mxu0 %v2014_v1  ;;  %v366_v34 = vcombine.high %v362_v32, %v362_v32 }
  0xde   : > { %1911 = vmatpush3.xpose.msk.msra.mxu1 %vm367_vm2, %v2101_v25  ;;  %1912 = vmatprep.mubr.msk.f32.mxu1 %vm2015_vm1, %v2014_v1 }
  0xdf   : > { %1918 = vmatmul.mubr.msk.f32.vlgmr.msra.gmra.mxu0 %vm367_vm2, %v348_v26  ;;  %1920 = vmatprep.subr.mxu1 %v2014_v1 }
  0xe0   : > { %1926 = vmatpush3.xpose.msk.msra.mxu0 %vm367_vm2, %v2110_v27  ;;  %1927 = vmatprep.mubr.msk.f32.mxu0 %vm2015_vm1, %v2014_v1 }
  0xe1   : > { %1913 = vmatmul.mubr.msk.f32.vlgmr.msra.gmra.mxu1 %vm367_vm2, %v365_v29  ;;  %1935 = vmatprep.subr.mxu0 %v2014_v1 }
  0xe2   : > { %1921 = vmatpush3.xpose.msk.msra.mxu1 %vm367_vm2, %v2119_v30  ;;  %1922 = vmatprep.mubr.msk.f32.mxu1 %vm2015_vm1, %v2014_v1 }
  0xe3   : > { %1928 = vmatmul.mubr.msk.f32.vlgmr.msra.gmra.mxu0 %vm367_vm2, %v364_v31  ;;  %1930 = vmatprep.subr.mxu1 %v2014_v1 }
  0xe4   : > { %1936 = vmatpush3.msra.mxu0 %v227_v4  ;;  %1937 = vmatprep.mubr.msk.f32.mxu0 %vm2015_vm1, %v2014_v1 }
  0xe5   : > { %1923 = vmatmul.mubr.msk.f32.vlgmr.msra.gmra.mxu1 %vm367_vm2, %v362_v32  ;;  %1945 = vmatprep.subr.mxu0 %v2014_v1 }
  0xe6   : > { %1931 = vmatpush3.xpose.msk.msra.mxu1 %vm367_vm2, %v2134_v33  ;;  %1932 = vmatprep.mubr.msk.f32.mxu1 %vm2015_vm1, %v2014_v1 }
  0xe7   : > { %1940 = vmatprep.subr.mxu1 %v2014_v1 }
  0xe9   : > { %1933 = vmatmul.mubr.msk.f32.vlgmr.msra.gmra.mxu1 %vm367_vm2, %v366_v34 }
  0xea   : > { %1941 = vmatpush3.msra.mxu1 %v228_v20  ;;  %1942 = vmatprep.mubr.msk.f32.mxu1 %vm2015_vm1, %v2014_v1 }
  0xeb   : > { %1950 = vmatprep.subr.mxu1 %v2014_v1 }
 0x161   : > { %v1629_v35 = vpop.xlane.xlu1 %1628 }
 0x162   : > { %v1630_v36 = vmax.f32 %v1629_v35, 1e-24 }
 0x164   : > { %1986 = vrsqrt.f32 %v1630_v36 }
 0x171   : > { %v1987_v37 = vpop.eup %1986 }
 0x172   : > { %v1632_v38 = vmul.f32 %v1987_v37, %v313_v12 }
 0x174   : > { %1693 = vst.msk [vmem:[%s221_s7] sm:$0xff] %vm367_vm2, %v1632_v38 }
 0x199   : > { %v439_v39 = vpop.f32.mrf.mxu1 }
 0x19b   : > { %v1899_v40 = vpop.f32.mrf.mxu1  ;;  %v589_v41 = vpop.f32.mrf.mxu0 }
 0x19c   : > { %v979_v48 = vrot.slane %v589_v41, 6 }
 0x19d   : > { %v514_v42 = vpop.f32.mrf.mxu1  ;;  %v1909_v43 = vpop.f32.mrf.mxu0 }
 0x19e   : > { %v976_v44 = vrot.slane %v514_v42, 7 }
 0x19f   : > { %v1904_v45 = vpop.f32.mrf.mxu1  ;;  %v739_v46 = vpop.f32.mrf.mxu0 }
 0x1a0   : > { %v978_v47 = vsel %vm977_vm3, %v976_v44, %v439_v39  ;;  %v985_v56 = vrot.slane %v739_v46, 4 }
 0x1a1   : > { %v664_v49 = vpop.f32.mrf.mxu1  ;;  %v1919_v50 = vpop.f32.mrf.mxu0  ;;  %v981_v52 = vsel %vm980_vm4, %v979_v48, %v978_v47 }
 0x1a2   : > { %v982_v51 = vrot.slane %v664_v49, 5 }
 0x1a3   : > { %v1914_v53 = vpop.f32.mrf.mxu1  ;;  %v889_v54 = vpop.f32.mrf.mxu0 }
 0x1a4   : > { %v984_v55 = vsel %vm983_vm5, %v982_v51, %v981_v52  ;;  %v991_v63 = vrot.slane %v889_v54, 2 }
 0x1a5   : > { %v814_v57 = vpop.f32.mrf.mxu1  ;;  %v1929_v58 = vpop.f32.mrf.mxu0  ;;  %v987_v61 = vsel %vm986_vm6, %v985_v56, %v984_v55 }
 0x1a6   : > { %v988_v59 = vrot.slane %v814_v57, 3 }
 0x1a7   : > { %v1924_v60 = vpop.f32.mrf.mxu1 }
 0x1a8   : > { %v990_v62 = vsel %vm989_vm7, %v988_v59, %v987_v61 }
 0x1a9   : > { %v964_v0 = vpop.f32.mrf.mxu1  ;;  %v993_v4 = vsel %vm992_vm8, %v991_v63, %v990_v62 }
 0x1aa   : > { %v994_v2 = vrot.slane %v964_v0, 1 }
 0x1ab   : > { %v1934_v3 = vpop.f32.mrf.mxu1 }
 0x1ac   : > { %v996_v6 = vsel %vm995_vm9, %v994_v2, %v993_v4 }
 0x1ad   : > { %v999_v7 = vsel %vm998_vm10, %v996_v6, -inf }
 0x1ae   : > { %1000 = vmax.xlane.f32.xlu0 %v999_v7 }
 0x237   : > { %v1001_v8 = vpop.xlane.xlu0 %1000 }
 0x238   : > { %v1003_v9 = vrot.slane %v1001_v8, 1  ;;  %v1004_v10 = vrot.slane %v1001_v8, 2  ;;  %v1005_v11 = vrot.slane %v1001_v8, 3  ;;  %v1006_v12 = vrot.slane %v1001_v8, 4 }
 0x239   : > { %v1018_v13 = vsub.f32 %v439_v39, %v1001_v8  ;;  %v1007_v14 = vrot.slane %v1001_v8, 5  ;;  %v1008_v20 = vrot.slane %v1001_v8, 6  ;;  %v1009_v24 = vrot.slane %v1001_v8, 7 }
 0x23a   : > { %v1019_v15 = vsub.f32 %v514_v42, %v1003_v9  ;;  %v1020_v16 = vsub.f32 %v589_v41, %v1004_v10  ;;  %v1021_v17 = vsub.f32 %v664_v49, %v1005_v11  ;;  %v1022_v21 = vsub.f32 %v739_v46, %v1006_v12 }
 0x23b   : > { %v1026_v18 = vmul.f32 1.442695, %v1018_v13  ;;  %v1023_v26 = vsub.f32 %v814_v57, %v1007_v14  ;;  %v1024_v29 = vsub.f32 %v889_v54, %v1008_v20  ;;  %v1025_v32 = vsub.f32 %v964_v0, %v1009_v24 }
 0x23c   : > { %v1028_v19 = vmul.f32 1.442695, %v1019_v15  ;;  %v1030_v22 = vmul.f32 1.442695, %v1020_v16  ;;  %v1032_v28 = vmul.f32 1.442695, %v1021_v17 }
 0x23d   : > { %1988 = vpow2.f32 %v1026_v18  ;;  %v1034_v31 = vmul.f32 1.442695, %v1022_v21  ;;  %v1036_v34 = vmul.f32 1.442695, %v1023_v26  ;;  %v1038_v35 = vmul.f32 1.442695, %v1024_v29 }
 0x23e   : > { %1990 = vpow2.f32 %v1028_v19  ;;  %v1040_v36 = vmul.f32 1.442695, %v1025_v32 }
 0x23f   : > { %1992 = vpow2.f32 %v1030_v22 }
 0x240   : > { %1994 = vpow2.f32 %v1032_v28 }
 0x241   : > { %1996 = vpow2.f32 %v1034_v31 }
 0x242   : > { %1998 = vpow2.f32 %v1036_v34 }
 0x243   : > { %2000 = vpow2.f32 %v1038_v35 }
 0x244   : > { %2002 = vpow2.f32 %v1040_v36 }
 0x24a   : > { %v1989_v37 = vpop.eup %1988 }
 0x24b   : > { %v1991_v38 = vpop.eup %1990  ;;  %1938 = vmatmul.mubr.msk.f32.vlgmr.msra.gmra.mxu0 %vm998_vm10, %v1989_v37 }
 0x24c   : > { %1946 = vmatpush3.msra.mxu0 %v2084_v5  ;;  %1943 = vmatmul.mubr.msk.f32.vlgmr.msra.gmra.mxu1 %vm998_vm10, %v1991_v38  ;;  %v1993_v39 = vpop.eup %1992 }
 0x24d   : > { %1951 = vmatpush3.msra.mxu1 %v2101_v25  ;;  %1947 = vmatprep.mubr.msk.f32.mxu0 %vm2015_vm1, %v2014_v1  ;;  %v1995_v40 = vpop.eup %1994 }
 0x24e   : > { %1955 = vmatprep.subr.mxu0 %v2014_v1  ;;  %1952 = vmatprep.mubr.msk.f32.mxu1 %vm2015_vm1, %v2014_v1  ;;  %v1997_v5 = vpop.eup %1996 }
 0x24f   : > { %1948 = vmatmul.mubr.msk.f32.vlgmr.msra.gmra.mxu0 %vm998_vm10, %v1993_v39  ;;  %1960 = vmatprep.subr.mxu1 %v2014_v1  ;;  %v1999_v25 = vpop.eup %1998 }
 0x250   : > { %1956 = vmatpush3.msra.mxu0 %v2093_v23  ;;  %1953 = vmatmul.mubr.msk.f32.vlgmr.msra.gmra.mxu1 %vm998_vm10, %v1995_v40  ;;  %v2001_v23 = vpop.eup %2000 }
 0x251   : > { %1961 = vmatpush3.msra.mxu1 %v2119_v30  ;;  %1957 = vmatprep.mubr.msk.f32.mxu0 %vm2015_vm1, %v2014_v1  ;;  %v2003_v30 = vpop.eup %2002 }
 0x252   : > { %1965 = vmatprep.subr.mxu0 %v2014_v1  ;;  %1962 = vmatprep.mubr.msk.f32.mxu1 %vm2015_vm1, %v2014_v1 }
 0x253   : > { %1958 = vmatmul.mubr.msk.f32.vlgmr.msra.gmra.mxu0 %vm998_vm10, %v1997_v5  ;;  %1970 = vmatprep.subr.mxu1 %v2014_v1 }
 0x254   : > { %1966 = vmatpush3.msra.mxu0 %v2110_v27  ;;  %1963 = vmatmul.mubr.msk.f32.vlgmr.msra.gmra.mxu1 %vm998_vm10, %v1999_v25 }
 0x255   : > { %1971 = vmatpush3.msra.mxu1 %v2134_v33  ;;  %1967 = vmatprep.mubr.msk.f32.mxu0 %vm2015_vm1, %v2014_v1 }
 0x256   : > { %1972 = vmatprep.mubr.msk.f32.mxu1 %vm2015_vm1, %v2014_v1 }
 0x257   : > { %1968 = vmatmul.mubr.msk.f32.vlgmr.msra.gmra.mxu0 %vm998_vm10, %v2001_v23 }
 0x258   : > { %1973 = vmatmul.mubr.msk.f32.vlgmr.msra.gmra.mxu1 %vm998_vm10, %v2003_v30 }
 0x30b   : > { %v1111_v41 = vpop.f32.mrf.mxu0 }
 0x30c   : > { %v1184_v42 = vpop.f32.mrf.mxu1  ;;  %v1633_v45 = vmul.f32 %v1111_v41, %v1111_v41 }
 0x30d   : > { %v1939_v43 = vpop.f32.mrf.mxu0  ;;  %v1634_v27 = vmul.f32 %v1184_v42, %v1184_v42 }
 0x30e   : > { %v1944_v44 = vpop.f32.mrf.mxu1 }
 0x30f   : > { %v1649_v46 = vrot.slane %v1634_v27, 7  ;;  %v1257_v33 = vpop.f32.mrf.mxu0 }
 0x310   : > { %v1635_v47 = vmul.f32 %v1257_v33, %v1257_v33  ;;  %v1330_v48 = vpop.f32.mrf.mxu1 }
 0x311   : > { %v1650_v49 = vsel %vm977_vm3, %v1649_v46, %v1633_v45  ;;  %v1949_v50 = vpop.f32.mrf.mxu0  ;;  %v1636_v51 = vmul.f32 %v1330_v48, %v1330_v48 }
 0x312   : > { %v1651_v1 = vrot.slane %v1635_v47, 6  ;;  %v1954_v52 = vpop.f32.mrf.mxu1 }
 0x313   : > { %v1653_v53 = vrot.slane %v1636_v51, 5  ;;  %v1403_v54 = vpop.f32.mrf.mxu0 }
 0x314   : > { %v1652_v55 = vsel %vm980_vm4, %v1651_v1, %v1650_v49  ;;  %v1637_v56 = vmul.f32 %v1403_v54, %v1403_v54  ;;  %v1476_v57 = vpop.f32.mrf.mxu1 }
 0x315   : > { %v1654_v58 = vsel %vm983_vm5, %v1653_v53, %v1652_v55  ;;  %v1959_v59 = vpop.f32.mrf.mxu0  ;;  %v1638_v60 = vmul.f32 %v1476_v57, %v1476_v57 }
 0x316   : > { %v1655_v61 = vrot.slane %v1637_v56, 4  ;;  %v1964_v62 = vpop.f32.mrf.mxu1 }
 0x317   : > { %v1657_v63 = vrot.slane %v1638_v60, 3  ;;  %v1549_v0 = vpop.f32.mrf.mxu0 }
 0x318   : > { %v1656_v2 = vsel %vm986_vm6, %v1655_v61, %v1654_v58  ;;  %v1639_v3 = vmul.f32 %v1549_v0, %v1549_v0  ;;  %v1622_v4 = vpop.f32.mrf.mxu1 }
 0x319   : > { %v1969_v6 = vpop.f32.mrf.mxu0  ;;  %v1640_v7 = vmul.f32 %v1622_v4, %v1622_v4  ;;  %v1658_v8 = vsel %vm989_vm7, %v1657_v63, %v1656_v2 }
 0x31a   : > { %v1659_v9 = vrot.slane %v1639_v3, 2  ;;  %v1974_v10 = vpop.f32.mrf.mxu1 }
 0x31b   : > { %v1661_v11 = vrot.slane %v1640_v7, 1 }
 0x31c   : > { %v1660_v12 = vsel %vm992_vm8, %v1659_v9, %v1658_v8 }
 0x31d   : > { %v1662_v13 = vsel %vm995_vm9, %v1661_v11, %v1660_v12 }
 0x31e   : > { %v1664_v14 = vsel %vm367_vm2, %v1662_v13, 0.0 }
 0x31f   : > { %1665 = vadd.xlane.f32.xlu0 %v1664_v14 }
 0x3a8   : > { %v1666_v15 = vpop.xlane.xlu0 %1665 }
 0x3a9   : > { %v1667_v16 = vmax.f32 %v1666_v15, 1e-24 }
 0x3ab   : > { %2004 = vrsqrt.f32 %v1667_v16 }
 0x3b8   : > { %v2005_v17 = vpop.eup %2004 }
 0x3b9   : > { %v1670_v18 = vrot.slane %v2005_v17, 1  ;;  %v1671_v19 = vrot.slane %v2005_v17, 2  ;;  %v1672_v20 = vrot.slane %v2005_v17, 3  ;;  %v1673_v21 = vrot.slane %v2005_v17, 4 }
 0x3ba   : > { %v1674_v22 = vrot.slane %v2005_v17, 5  ;;  %v1675_v24 = vrot.slane %v2005_v17, 6  ;;  %v1676_v26 = vrot.slane %v2005_v17, 7  ;;  %v1685_v34 = vmul.f32 %v2005_v17, %v1111_v41 }
 0x3bb   : > { %v1686_v28 = vmul.f32 %v1670_v18, %v1184_v42  ;;  %v1687_v29 = vmul.f32 %v1671_v19, %v1257_v33  ;;  %v1688_v31 = vmul.f32 %v1672_v20, %v1330_v48  ;;  %v1689_v32 = vmul.f32 %v1673_v21, %v1403_v54 }
 0x3bc   : > { %v1690_v35 = vmul.f32 %v1674_v22, %v1476_v57  ;;  %v1691_v38 = vmul.f32 %v1675_v24, %v1549_v0  ;;  %v1692_v39 = vmul.f32 %v1676_v26, %v1622_v4 }
 0x3bd   : > { %v1702_v36 = vrot.slane %v1686_v28, 7  ;;  %v1704_v37 = vrot.slane %v1687_v29, 6  ;;  %v1706_v5 = vrot.slane %v1688_v31, 5  ;;  %v1708_v23 = vrot.slane %v1689_v32, 4 }
 0x3be   : > { %v1710_v43 = vrot.slane %v1690_v35, 3  ;;  %v1712_v27 = vrot.slane %v1691_v38, 2  ;;  %v1714_v44 = vrot.slane %v1692_v39, 1 }
 0x3bf   : > { %v1703_v40 = vsel %vm977_vm3, %v1702_v36, %v1685_v34 }
 0x3c0   : > { %v1705_v25 = vsel %vm980_vm4, %v1704_v37, %v1703_v40 }
 0x3c1   : > { %v1707_v30 = vsel %vm983_vm5, %v1706_v5, %v1705_v25 }
 0x3c2   : > { %v1709_v42 = vsel %vm986_vm6, %v1708_v23, %v1707_v30 }
 0x3c3   : > { %v1711_v41 = vsel %vm989_vm7, %v1710_v43, %v1709_v42 }
 0x3c4   : > { %v1713_v45 = vsel %vm992_vm8, %v1712_v27, %v1711_v41 }
 0x3c5   : > { %v1715_v46 = vsel %vm995_vm9, %v1714_v44, %v1713_v45 }
 0x3c6   : > { %1717 = vst.msk [vmem:[%s225_s10] sm:$0xff] %vm367_vm2, %v1715_v46 }
 0x3c7 PF: > { %s15_s15 = sadd.s32 1, %s2012_s15  }
 0x3c8   : > { %p12_p5 = scmp.ge.s32.totalorder %s15_s15, 5  }
 0x3ca   :  { %14 = sbr.rel (!%p12_p5) target bundleno = 1 (0x1), region = 77 }

</bundles_post_ra>
